<compile_context>
chip_gen: v7x
topology: tpu7x:2x2x1
jax: 0.10.0
libtpu: 0.0.40
codegen_flags: <defaults>
</compile_context>

<pallas_src>
import functools

import jax
import jax.numpy as jnp
from jax.experimental import pallas as pl
from jax.experimental.pallas import tpu as pltpu


def _focal_kernel(a_ref, x_ref, t_ref, out_ref, *, gamma, use_alpha, c_dim,
                  s_total, s_tile, mask_tpad, mask_ragged):
    """One grid step: (1, C, S_t, 128) logits tile -> (1, 1, 1, 128) partial."""
    j = pl.program_id(1)

    t = t_ref[0]                                           # (S_t, 128) int32

    # Load the C class slabs once; everything below operates on fully
    # sublane+lane dense (S_t, 128) vregs.  C is tiny, so the class reduction
    # is an unrolled chain of VALU ops.
    xs = [x_ref[0, c].astype(jnp.float32) for c in range(c_dim)]

    m = xs[0]
    for c in range(1, c_dim):
        m = jnp.maximum(m, xs[c])                          # (S_t, 128)

    need_pt = float(gamma) != 0.0                          # static
    sum_ez = jnp.zeros_like(m)
    z_t = jnp.zeros_like(m)
    ez_t = jnp.zeros_like(m) if need_pt else None
    at = jnp.ones_like(m) if use_alpha else None
    for c in range(c_dim):
        z_c = xs[c] - m
        ez_c = jnp.exp(z_c)
        sum_ez = sum_ez + ez_c
        hit = t == c                                       # one-hot for class c
        z_t = jnp.where(hit, z_c, z_t)
        if need_pt:
            ez_t = jnp.where(hit, ez_c, ez_t)
        if use_alpha:
            at = jnp.where(hit, a_ref[c], at)              # scalar read (SMEM)

    logpt = z_t - jnp.log(sum_ez)                          # exact log-softmax
    if use_alpha:
        logpt = logpt * at

    if not need_pt:                                        # gamma == 0: w == 1
        loss = -logpt
    else:
        # pt without a second exp; approx reciprocal runs on the (otherwise
        # idle) EUP slot and only feeds the focal weight, never logpt.
        pt = ez_t * pl.reciprocal(sum_ez, approx=True)
        one_minus_pt = jnp.maximum(1.0 - pt, 0.0)          # guard tiny <0
        g = float(gamma)
        if g == float(int(g)) and 0 < int(g) <= 4:
            w = one_minus_pt
            for _ in range(int(g) - 1):
                w = w * one_minus_pt
        else:
            w = jnp.power(one_minus_pt, jnp.float32(g))
        loss = -w * logpt                                  # (S_t, 128)

    # Zero out padding.  mask_tpad: HW padded to x128 in the wrapper (targets
    # padded with -1).  mask_ragged: last grid tile reads past the S axis
    # (uninitialized data); jnp.where is a select, so any NaN there is dropped.
    valid = None
    if mask_tpad:
        valid = t >= 0
    if mask_ragged:
        s_idx = jax.lax.broadcasted_iota(jnp.int32, (s_tile, 128), 0) + j * s_tile
        in_s = s_idx < s_total
        valid = in_s if valid is None else (valid & in_s)
    if valid is not None:
        loss = jnp.where(valid, loss, 0.0)

    # Lane-dense (1, 128) partial sum per grid step; final sum/mean in JAX.
    out_ref[...] = jnp.sum(loss, axis=0, keepdims=True).reshape(1, 1, 1, 128)


def focal_loss(logits, target, *, gamma=0.0, alpha=None, size_average=True,
               tile_bytes=2 * 1024 * 1024):
    """Forward pass of FocalLoss.

    logits : (N, C) or (N, C, *spatial) float array (f32 or bf16; bf16 stays
             bf16 in HBM and is widened to f32 inside the kernel)
    target : (N,) or (N, *spatial) int array
    alpha  : None, python float (binary -> [a, 1-a]), or per-class weight list
    tile_bytes : approx HBM bytes (logits + targets) moved per grid step.
                 ~2 MiB saturates v5e/v6e HBM; ~4 MiB recommended on v7x.
    """
    x = jnp.asarray(logits)
    t = jnp.asarray(target)

    if x.ndim == 2:
        # (N, C) classification path.  NOTE: this transpose is one extra HBM
        # round trip of the logits; with tiny C there is no lane-dense layout
        # without it.
        C = x.shape[1]
        x3 = jnp.transpose(x, (1, 0))[None]                # (1, C, N)
        Nb = 1
    else:
        # (N, C, *spatial): natural NCHW layout -> pure reshape, no transpose.
        Nb, C = x.shape[0], x.shape[1]
        x3 = x.reshape(Nb, C, -1)                          # (N, C, HW)
    HW = x3.shape[-1]
    R = Nb * HW                                            # logical rows

    t3 = t.reshape(Nb, HW).astype(jnp.int32)

    # Pad HW to a multiple of 128 once (targets padded with -1 -> masked).
    HW_pad = pl.cdiv(HW, 128) * 128
    pad = HW_pad - HW
    if pad:
        x3 = jnp.pad(x3, ((0, 0), (0, 0), (0, pad)))
        t3 = jnp.pad(t3, ((0, 0), (0, pad)), constant_values=-1)
    S = HW_pad // 128
    x4 = x3.reshape(Nb, C, S, 128)                         # sublane+lane dense
    t4 = t3.reshape(Nb, S, 128)

    # per-class alpha -> SMEM via scalar prefetch
    if alpha is None:
        use_alpha = False
        a = jnp.ones((C,), jnp.float32)                    # dummy, unused
    else:
        use_alpha = True
        if isinstance(alpha, (float, int)):
            a_vals = [float(alpha), 1.0 - float(alpha)]
        else:
            a_vals = [float(v) for v in alpha]
        a_vals = (a_vals + [1.0] * C)[:C]                  # pad with neutral 1.0
        a = jnp.asarray(a_vals, jnp.float32)

    # --- tile selection (dense layout -> no hidden sublane padding) ---------
    itemsize = jnp.dtype(x4.dtype).itemsize
    bytes_per_s = (C * itemsize + 4) * 128                 # logits + int32 tgts
    s_budget = max(8, (int(tile_bytes) // bytes_per_s) // 8 * 8)
    S_t = S if S <= s_budget else s_budget                 # mult-of-8 or == S
    # v7x megacore: with a single sample, make sure there are >= 2 grid steps.
    if Nb == 1 and S >= 16:
        half = pl.cdiv(pl.cdiv(S, 2), 8) * 8
        S_t = min(S_t, half)
    num_tiles = pl.cdiv(S, S_t)
    grid = (Nb, num_tiles)

    mask_tpad = pad > 0
    mask_ragged = (S % S_t) != 0

    # Explicit VMEM budget: double-buffered input blocks + slack.  Capped at
    # 48 MiB (safe on v5e/v6e 128 MiB and v7x 64 MiB physical VMEM).
    blk_bytes = bytes_per_s * S_t
    vmem_limit = int(min(max(2 * blk_bytes + (2 << 20), 16 << 20), 48 << 20))

    kernel = functools.partial(
        _focal_kernel, gamma=float(gamma), use_alpha=use_alpha, c_dim=C,
        s_total=S, s_tile=S_t, mask_tpad=mask_tpad, mask_ragged=mask_ragged)

    partials = pl.pallas_call(
        kernel,
        out_shape=jax.ShapeDtypeStruct((Nb, num_tiles, 1, 128), jnp.float32),
        grid_spec=pltpu.PrefetchScalarGridSpec(
            num_scalar_prefetch=1,
            grid=grid,
            in_specs=[
                pl.BlockSpec((1, C, S_t, 128),
                             lambda n, j, a_ref: (n, 0, j, 0)),   # logits
                pl.BlockSpec((1, S_t, 128),
                             lambda n, j, a_ref: (n, j, 0)),      # targets
            ],
            out_specs=pl.BlockSpec((1, 1, 1, 128),
                                   lambda n, j, a_ref: (n, j, 0, 0)),
        ),
        compiler_params=pltpu.CompilerParams(
            dimension_semantics=("parallel", "parallel"),
            vmem_limit_bytes=vmem_limit),
    )(a, x4, t4)

    total = jnp.sum(partials)
    if size_average:
        return total / jnp.float32(R)
    return total


def _focal_loss_ref(logits, target, gamma, alpha, size_average):
    # pure-JAX mirror of the PyTorch forward, for a sanity check
    x = jnp.asarray(logits, jnp.float32)
    if x.ndim > 2:
        N, C = x.shape[0], x.shape[1]
        x = jnp.transpose(x.reshape(N, C, -1), (0, 2, 1)).reshape(-1, C)
    t = jnp.asarray(target).reshape(-1)
    logp = jax.nn.log_softmax(x, axis=1)
    logpt = jnp.take_along_axis(logp, t[:, None], axis=1)[:, 0]
    pt = jnp.exp(logpt)
    if alpha is not None:
        if isinstance(alpha, (float, int)):
            a = jnp.asarray([alpha, 1.0 - alpha], jnp.float32)
        else:
            a = jnp.asarray(alpha, jnp.float32)
        logpt = logpt * a[t]
    loss = -1.0 * (1.0 - pt) ** gamma * logpt
    return loss.mean() if size_average else loss.sum()


if __name__ == "__main__":
    key = jax.random.PRNGKey(0)
    k1, k2, k3, k4, k5, k6 = jax.random.split(key, 6)

    # --- main case: NCHW logits, per-class alpha, gamma=2, mean reduction ---
    N, C, H, W = 2, 4, 16, 16
    logits = jax.random.normal(k1, (N, C, H, W), dtype=jnp.float32)
    target = jax.random.randint(k2, (N, H, W), 0, C, dtype=jnp.int32)

    out = focal_loss(logits, target, gamma=2.0, alpha=[0.25, 0.25, 0.25, 0.25],
                     size_average=True)
    out = jax.block_until_ready(out)
    ref = _focal_loss_ref(logits, target, 2.0, [0.25, 0.25, 0.25, 0.25], True)
    assert jnp.allclose(out, ref, rtol=2e-3, atol=1e-6), (out, ref)

    # --- no alpha, gamma=0, sum reduction (pt never feeds the result) -------
    out2 = focal_loss(logits, target, gamma=0.0, alpha=None, size_average=False)
    out2 = jax.block_until_ready(out2)
    ref2 = _focal_loss_ref(logits, target, 0.0, None, False)
    assert jnp.allclose(out2, ref2, rtol=1e-4, atol=1e-4), (out2, ref2)

    # --- 2-D logits path, non-integer gamma ---------------------------------
    logits2d = jax.random.normal(k3, (8, 4), dtype=jnp.float32)
    target2d = jax.random.randint(k4, (8,), 0, 4, dtype=jnp.int32)
    out3 = focal_loss(logits2d, target2d, gamma=1.5, alpha=None,
                      size_average=True)
    out3 = jax.block_until_ready(out3)
    ref3 = _focal_loss_ref(logits2d, target2d, 1.5, None, True)
    assert jnp.allclose(out3, ref3, rtol=2e-3, atol=1e-6), (out3, ref3)

    # --- HW not a multiple of 128 (exercises pad + target-sentinel mask) ----
    logits_p = jax.random.normal(k5, (2, 2, 5, 7), dtype=jnp.float32)
    target_p = jax.random.randint(k6, (2, 5, 7), 0, 2, dtype=jnp.int32)
    out4 = focal_loss(logits_p, target_p, gamma=2.0, alpha=0.25,
                      size_average=True)
    out4 = jax.block_until_ready(out4)
    ref4 = _focal_loss_ref(logits_p, target_p, 2.0, 0.25, True)
    assert jnp.allclose(out4, ref4, rtol=2e-3, atol=1e-6), (out4, ref4)

    # --- multi-tile + ragged last tile (tiny tile_bytes forces it) ----------
    kl, kt = jax.random.split(k5)
    logits_r = jax.random.normal(kl, (1, 4, 40, 32), dtype=jnp.float32)
    target_r = jax.random.randint(kt, (1, 40, 32), 0, 4, dtype=jnp.int32)
    out5 = focal_loss(logits_r, target_r, gamma=2.0, alpha=None,
                      size_average=True, tile_bytes=4096)
    out5 = jax.block_until_ready(out5)
    ref5 = _focal_loss_ref(logits_r, target_r, 2.0, None, True)
    assert jnp.allclose(out5, ref5, rtol=2e-3, atol=1e-6), (out5, ref5)

    print("KERNEL_OK")
</pallas_src>

<mosaic_0001>
module attributes {stable_mosaic.version = 11 : i64} {
  func.func @_focal_kernel(%arg0: i32, %arg1: i32, %arg2: memref<4xf32, #tpu.memory_space<smem>>, %arg3: memref<1x4x2x128xf32, #tpu.memory_space<vmem>>, %arg4: memref<1x2x128xi32, #tpu.memory_space<vmem>>, %arg5: memref<1x1x1x128xf32, #tpu.memory_space<vmem>>) attributes {dimension_semantics = [#tpu.dimension_semantics<parallel>, #tpu.dimension_semantics<parallel>], iteration_bounds = array<i64: 2, 1>, scalar_prefetch = 1 : i64, scratch_operands = 0 : i64, tpu.core_type = #tpu.core_type<tc>, window_params = [{transform_indices = @transform_0, window_bounds = array<i64: 1, 4, 2, 128>}, {transform_indices = @transform_1, window_bounds = array<i64: 1, 2, 128>}, {transform_indices = @transform_2, window_bounds = array<i64: 1, 1, 1, 128>}]} {
    %c0 = arith.constant 0 : index
    %c0_0 = arith.constant 0 : index
    %c0_1 = arith.constant 0 : index
    %0 = vector.load %arg4[%c0, %c0_0, %c0_1] : memref<1x2x128xi32, #tpu.memory_space<vmem>>, vector<1x2x128xi32>
    %1 = vector.shape_cast %0 : vector<1x2x128xi32> to vector<2x128xi32>
    %c0_2 = arith.constant 0 : index
    %c0_3 = arith.constant 0 : index
    %c0_4 = arith.constant 0 : index
    %c0_5 = arith.constant 0 : index
    %2 = vector.load %arg3[%c0_2, %c0_3, %c0_4, %c0_5] : memref<1x4x2x128xf32, #tpu.memory_space<vmem>>, vector<1x1x2x128xf32>
    %3 = vector.shape_cast %2 : vector<1x1x2x128xf32> to vector<2x128xf32>
    %c0_6 = arith.constant 0 : index
    %c1 = arith.constant 1 : index
    %c0_7 = arith.constant 0 : index
    %c0_8 = arith.constant 0 : index
    %4 = vector.load %arg3[%c0_6, %c1, %c0_7, %c0_8] : memref<1x4x2x128xf32, #tpu.memory_space<vmem>>, vector<1x1x2x128xf32>
    %5 = vector.shape_cast %4 : vector<1x1x2x128xf32> to vector<2x128xf32>
    %c0_9 = arith.constant 0 : index
    %c2 = arith.constant 2 : index
    %c0_10 = arith.constant 0 : index
    %c0_11 = arith.constant 0 : index
    %6 = vector.load %arg3[%c0_9, %c2, %c0_10, %c0_11] : memref<1x4x2x128xf32, #tpu.memory_space<vmem>>, vector<1x1x2x128xf32>
    %7 = vector.shape_cast %6 : vector<1x1x2x128xf32> to vector<2x128xf32>
    %c0_12 = arith.constant 0 : index
    %c3 = arith.constant 3 : index
    %c0_13 = arith.constant 0 : index
    %c0_14 = arith.constant 0 : index
    %8 = vector.load %arg3[%c0_12, %c3, %c0_13, %c0_14] : memref<1x4x2x128xf32, #tpu.memory_space<vmem>>, vector<1x1x2x128xf32>
    %9 = vector.shape_cast %8 : vector<1x1x2x128xf32> to vector<2x128xf32>
    %10 = arith.maximumf %3, %5 : vector<2x128xf32>
    %11 = arith.maximumf %10, %7 : vector<2x128xf32>
    %12 = arith.maximumf %11, %9 : vector<2x128xf32>
    %cst = arith.constant 0.000000e+00 : f32
    %13 = vector.broadcast %cst : f32 to vector<2x128xf32>
    %cst_15 = arith.constant 0.000000e+00 : f32
    %14 = vector.broadcast %cst_15 : f32 to vector<2x128xf32>
    %cst_16 = arith.constant 0.000000e+00 : f32
    %15 = vector.broadcast %cst_16 : f32 to vector<2x128xf32>
    %cst_17 = arith.constant 1.000000e+00 : f32
    %16 = vector.broadcast %cst_17 : f32 to vector<2x128xf32>
    %17 = arith.subf %3, %12 : vector<2x128xf32>
    %18 = math.exp %17 : vector<2x128xf32>
    %19 = arith.addf %13, %18 : vector<2x128xf32>
    %c0_i32 = arith.constant 0 : i32
    %20 = vector.broadcast %c0_i32 : i32 to vector<2x128xi32>
    %21 = arith.cmpi eq, %1, %20 : vector<2x128xi32>
    %22 = arith.select %21, %17, %14 : vector<2x128xi1>, vector<2x128xf32>
    %23 = arith.select %21, %18, %15 : vector<2x128xi1>, vector<2x128xf32>
    %c0_18 = arith.constant 0 : index
    %24 = memref.load %arg2[%c0_18] : memref<4xf32, #tpu.memory_space<smem>>
    %25 = vector.broadcast %24 : f32 to vector<2x128xf32>
    %26 = arith.select %21, %25, %16 : vector<2x128xi1>, vector<2x128xf32>
    %27 = arith.subf %5, %12 : vector<2x128xf32>
    %28 = math.exp %27 : vector<2x128xf32>
    %29 = arith.addf %19, %28 : vector<2x128xf32>
    %c1_i32 = arith.constant 1 : i32
    %30 = vector.broadcast %c1_i32 : i32 to vector<2x128xi32>
    %31 = arith.cmpi eq, %1, %30 : vector<2x128xi32>
    %32 = arith.select %31, %27, %22 : vector<2x128xi1>, vector<2x128xf32>
    %33 = arith.select %31, %28, %23 : vector<2x128xi1>, vector<2x128xf32>
    %c1_19 = arith.constant 1 : index
    %34 = memref.load %arg2[%c1_19] : memref<4xf32, #tpu.memory_space<smem>>
    %35 = vector.broadcast %34 : f32 to vector<2x128xf32>
    %36 = arith.select %31, %35, %26 : vector<2x128xi1>, vector<2x128xf32>
    %37 = arith.subf %7, %12 : vector<2x128xf32>
    %38 = math.exp %37 : vector<2x128xf32>
    %39 = arith.addf %29, %38 : vector<2x128xf32>
    %c2_i32 = arith.constant 2 : i32
    %40 = vector.broadcast %c2_i32 : i32 to vector<2x128xi32>
    %41 = arith.cmpi eq, %1, %40 : vector<2x128xi32>
    %42 = arith.select %41, %37, %32 : vector<2x128xi1>, vector<2x128xf32>
    %43 = arith.select %41, %38, %33 : vector<2x128xi1>, vector<2x128xf32>
    %c2_20 = arith.constant 2 : index
    %44 = memref.load %arg2[%c2_20] : memref<4xf32, #tpu.memory_space<smem>>
    %45 = vector.broadcast %44 : f32 to vector<2x128xf32>
    %46 = arith.select %41, %45, %36 : vector<2x128xi1>, vector<2x128xf32>
    %47 = arith.subf %9, %12 : vector<2x128xf32>
    %48 = math.exp %47 : vector<2x128xf32>
    %49 = arith.addf %39, %48 : vector<2x128xf32>
    %c3_i32 = arith.constant 3 : i32
    %50 = vector.broadcast %c3_i32 : i32 to vector<2x128xi32>
    %51 = arith.cmpi eq, %1, %50 : vector<2x128xi32>
    %52 = arith.select %51, %47, %42 : vector<2x128xi1>, vector<2x128xf32>
    %53 = arith.select %51, %48, %43 : vector<2x128xi1>, vector<2x128xf32>
    %c3_21 = arith.constant 3 : index
    %54 = memref.load %arg2[%c3_21] : memref<4xf32, #tpu.memory_space<smem>>
    %55 = vector.broadcast %54 : f32 to vector<2x128xf32>
    %56 = arith.select %51, %55, %46 : vector<2x128xi1>, vector<2x128xf32>
    %57 = math.log %49 : vector<2x128xf32>
    %58 = arith.subf %52, %57 : vector<2x128xf32>
    %59 = arith.mulf %58, %56 : vector<2x128xf32>
    %60 = tpu.reciprocal %49 {approx = true} : vector<2x128xf32> -> vector<2x128xf32>
    %61 = arith.mulf %53, %60 : vector<2x128xf32>
    %cst_22 = arith.constant 1.000000e+00 : f32
    %62 = vector.broadcast %cst_22 : f32 to vector<2x128xf32>
    %63 = arith.subf %62, %61 : vector<2x128xf32>
    %cst_23 = arith.constant 0.000000e+00 : f32
    %64 = vector.broadcast %cst_23 : f32 to vector<2x128xf32>
    %65 = arith.maximumf %63, %64 : vector<2x128xf32>
    %66 = arith.mulf %65, %65 : vector<2x128xf32>
    %cst_24 = arith.constant 0.000000e+00 : f32
    %67 = vector.broadcast %cst_24 : f32 to vector<2x128xf32>
    %68 = arith.subf %67, %66 : vector<2x128xf32>
    %69 = arith.mulf %68, %59 : vector<2x128xf32>
    %cst_25 = arith.constant dense<0.000000e+00> : vector<128xf32>
    %70 = vector.multi_reduction <add>, %69, %cst_25 [0] : vector<2x128xf32> to vector<128xf32>
    %71 = vector.shape_cast %70 : vector<128xf32> to vector<1x128xf32>
    %72 = vector.shape_cast %71 : vector<1x128xf32> to vector<1x1x1x128xf32>
    %c0_26 = arith.constant 0 : index
    %c0_27 = arith.constant 0 : index
    %c0_28 = arith.constant 0 : index
    %c0_29 = arith.constant 0 : index
    %73 = vector.load %arg5[%c0_26, %c0_27, %c0_28, %c0_29] : memref<1x1x1x128xf32, #tpu.memory_space<vmem>>, vector<1x1x1x128xf32>
    tpu.vector_store %arg5[%c0_26, %c0_27, %c0_28, %c0_29], %72 {strides = array<i32>} : memref<1x1x1x128xf32, #tpu.memory_space<vmem>>, vector<1x1x1x128xf32>,
    return
  }
  func.func @transform_0(%arg0: i32, %arg1: i32, %arg2: memref<4xf32, #tpu.memory_space<smem>>) -> (i32, i32, i32, i32) {
    %c0_i32 = arith.constant 0 : i32
    %c0_i32_0 = arith.constant 0 : i32
    %c0_i32_1 = arith.constant 0 : i32
    return %arg0, %c0_i32, %arg1, %c0_i32_0 : i32, i32, i32, i32
  }
  func.func @transform_1(%arg0: i32, %arg1: i32, %arg2: memref<4xf32, #tpu.memory_space<smem>>) -> (i32, i32, i32) {
    %c0_i32 = arith.constant 0 : i32
    %c0_i32_0 = arith.constant 0 : i32
    return %arg0, %arg1, %c0_i32 : i32, i32, i32
  }
  func.func @transform_2(%arg0: i32, %arg1: i32, %arg2: memref<4xf32, #tpu.memory_space<smem>>) -> (i32, i32, i32, i32) {
    %c0_i32 = arith.constant 0 : i32
    %c0_i32_0 = arith.constant 0 : i32
    %c0_i32_1 = arith.constant 0 : i32
    return %arg0, %arg1, %c0_i32, %c0_i32_0 : i32, i32, i32, i32
  }
}

</mosaic_0001>

<bundles_post_ra>
// kernel: tpu_custom_call.1
= control target key start
LH: loop header
LB: loop body
LE: loop exit
PB: predicated region body
PF: predicated region fallthrough
CT: control target
= control target key end

     0   :  { %s827_s0 = inlined_call_operand.hbm [shape: f32[4], index: 0, kind: input, shape index: {}]   ;;  %s828_s1 = inlined_call_operand.hbm [shape: f32[2,4,2,128], index: 1, kind: input, shape index: {}]   ;;  %s829_s2 = inlined_call_operand.vmem [shape: s32[2,2,128], index: 2, kind: input, shape index: {}]   ;;  %s830_s3 = inlined_call_operand.hbm [shape: f32[2,1,1,128], index: 3, kind: output, shape index: {}]  }
   0x1   :  { %s485_s14 = scalar_lea.hbm %s827_s0, 16 }
   0x2   :  { %p486_p0 = scmp.ne.s32.totalorder %s827_s0, %s485_s14  ;;  %p489_p1 = scmp.lt.u32.totalorder %s485_s14, %s827_s0 }
   0x4   :  { %p491_p2 = pnand %p489_p1, %p486_p0 }
   0x6   :  { %494 = shalt.err (!%p491_p2)  }
   0x7   :  { %s611_s19 = smov [#allocation3]  }
   0x8   :  { %9 = dma.hbm_to_smem %s827_s0, 16, %s611_s19, [#allocation2] }
   0x9   :  { %577 = dma.done.wait [#allocation2], 16 }
   0xa   :  { %578 = vsyncadd [#allocation2], 4294967280 }
   0xb   :  { %11 = sfence }
   0xc   :  { %12 = vsyncpa [#allocation5], 0 }
   0xd   :  { %14 = vsyncpa [#allocation5 + $0x1], 0 }
   0xe   :  { %15 = vsyncpa [#allocation6], 0 }
   0xf   :  { %17 = vsyncpa [#allocation6 + $0x1], 0  ;;  %s648_s22 = smov 0   ;;  %s650_s23 = smov 0  }
  0x10   :  { %s652_s24 = smov 0   ;;  %s654_s25 = smov 0  }
  0x11   :  { %s656_s26 = smov 0   ;;  %s658_s27 = smov 0  }
  0x12 LB: > { %s388_s0 = sadd.s32 4294967295, %s609_s27   ;;  %s389_s28 = sadd.s32 4294967294, %s609_s27   ;;  %s609_s27 = sphi %s658_s27, %s23_s27   ;;  %s605_s26 = sphi %s656_s26, %s845_s26   ;;  %s601_s25 = sphi %s654_s25, %s844_s25   ;;  %s597_s24 = sphi %s652_s24, %s843_s24   ;;  %s593_s23 = sphi %s650_s23, %s842_s23   ;;  %s589_s22 = sphi %s648_s22, %s841_s22  }
  0x13   : > { %s35_s29 = sadd.s32 1, %s605_s26  ;;  %s44_s30 = sadd.s32 1, %s597_s24 }
  0x14   : > { %p37_p3 = scmp.ge.s32.totalorder %s35_s29, 2  ;;  %p51_p4 = scmp.ne.s32.totalorder %s597_s24, %s593_s23 }
  0x15   : > { %p52_p5 = scmp.eq.s32.totalorder %s609_s27, 0  ;;  %p57_p6 = scmp.ne.s32.totalorder %s593_s23, %s589_s22 }
  0x16   : > { %s847_s29 = smov (%p37_p3, %s35_s29), 0  ;;  %p58_p8 = scmp.eq.s32.totalorder %s388_s0, 0 }
  0x17   : > { %p689_p7 = por %p52_p5, %p51_p4  ;;  %s39_s5 = ssub.s32 %s605_s26, %s847_s29 }
  0x18   : > { %p111_p9 = scmp.eq.s32.totalorder %s388_s0, 1  ;;  %p42_p10 = scmp.eq.s32.totalorder %s39_s5, 0 }
  0x19   : > { %p695_p11 = por %p58_p8, %p57_p6  ;;  %p117_p13 = scmp.eq.s32.totalorder %s389_s28, 1 }
  0x1a   : > { %p699_p12 = por %p111_p9, %p51_p4  ;;  %p420_p2 = scmp.lt.s32.totalorder %s609_s27, 2 }
  0x1b   : > { %s704_s8 = scalar_select %p42_p10, %s597_s24, %s44_s30  }
  0x1c   : > { %s834_s7 = scalar_select %p699_p12, 1, 0 }
  0x1d   : > { %p706_p0 = por %p117_p13, %p57_p6  ;;  %s137_s10 = sand.u32 1, %s597_s24  }
  0x1e   : > { %s392_s11 = sshll.u32 %s137_s10, 3  ;;  %s407_s12 = sshll.u32 %s605_s26, 7 }
  0x1f   : > { %s835_s9 = scalar_select %p706_p0, 1, 0 }
  0x20   : > { %s717_s15 = scalar_lea.hbm %s828_s1, %s407_s12  ;;  %s141_s16 = scalar_lea.vmem [#allocation4], %s392_s11 }
  0x21   : > { %s149_s17 = sshll.u32 %s141_s16, 4  ;;  %p723_p3 = pnand %p420_p2, %p689_p7  ;;  %s719_s17 = int_to_ptr.vmem [resolvable:$true] %s149_s17 }
  0x22   : > { %s728_s19 = scalar_lea.sflag [#allocation5], %s137_s10  ;;  %s495_s20 = scalar_lea.hbm %s717_s15, 128 }
  0x23   : > { %p496_p5 = scmp.ne.s32.totalorder %s717_s15, %s495_s20  ;;  %p497_p6 = pneg %p723_p3 }
  0x24   : > { %s500_s28 = scalar_lea.hbm %s828_s1, 256  ;;  %p501_p7 = scmp.lt.u32.totalorder %s717_s15, %s828_s1 }
  0x25   : > { %p498_p8 = pnand %p497_p6, %p496_p5  ;;  %p502_p10 = scmp.lt.u32.totalorder %s500_s28, %s495_s20 }
  0x26   : > { %p504_p2 = scmp.lt.u32.totalorder %s495_s20, %s717_s15 }
  0x27   : > { %p499_p9 = pneg %p498_p8  ;;  %p503_p13 = por %p502_p10, %p501_p7 }
  0x29   : > { %p505_p1 = por %p504_p2, %p503_p13 }
  0x2b   : > { %p506_p4 = pnand %p505_p1, %p499_p9 }
  0x2d   : > { %509 = shalt.err (!%p506_p4)
}
  0x2e   : > { %s510_s5 = scalar_lea.vmem %s719_s17, 128  ;;  %s612_s10 = smov [#allocation4]  }
  0x2f   : > { %p511_p5 = scmp.ne.s32.totalorder %s719_s17, %s510_s5  ;;  %s515_s11 = sshll.u32 %s612_s10, 4  ;;  %s516_s11 = int_to_ptr.vmem [resolvable:$false] %s515_s11 }
  0x30   : > { %s517_s12 = scalar_lea.vmem %s516_s11, 256  ;;  %p518_p12 = scmp.lt.s32.totalorder %s719_s17, %s516_s11 }
  0x31   : > { %p513_p8 = pnand %p511_p5, %p497_p6  ;;  %p519_p7 = scmp.lt.s32.totalorder %s517_s12, %s510_s5 }
  0x33   : > { %p514_p0 = pneg %p513_p8  ;;  %p520_p10 = por %p519_p7, %p518_p12 }
  0x35   : > { %p521_p13 = pnand %p520_p10, %p514_p0 }
  0x37   : > { %524 = shalt.err (!%p521_p13)
}
  0x38   : > { %s613_s13 = smov 32   ;;  %s614_s14 = smov 2  }
  0x39   : > { %415 = dma.hbm_to_vmem [thread:$0]  (!%p723_p3), %s717_s15, 128, %s719_s17, %s728_s19, %s613_s13, %s613_s13, %s614_s14  }
  0x3a   : > { %p167_p1 = scmp.lt.s32.totalorder %s609_s27, 3  ;;  %p837_p4 = scmp.ge.s32.totalorder %s609_s27, 1 }
  0x3c   : > { %p168_p6 = pnand %p837_p4, %p167_p1 }
  0x3d   : > { %s760_s16 = sand.u32 (!%p168_p6), 1, %s593_s23  }
  0x3e   : > { %171 = sbr.rel (%p168_p6) target bundleno = 150 (0x96), region = 28  ;;  %s396_s20 = sshll.u32 (!%p168_p6), %s760_s16, 3 }
  0x3f   : > { %s174_s21 = scalar_lea.sflag (!%p168_p6), [#allocation5], %s760_s16  ;;  %s177_s0 = scalar_lea.vmem (!%p168_p6), [#allocation4], %s396_s20 }
  0x45   : > { %580 = dma.done.wait (%p695_p11), %s174_s21, 128  }
  0x46   : > { %582 = vsyncadd (%p695_p11), %s174_s21, 4294967168  ;;  %v212_v0 = vld [vmem:[%s177_s0] sm:$0x3]  ;;  %v398_v1 = vld [vmem:[%s177_s0 + $0x2] sm:$0x3]  ;;  %p204_p12 = scmp.lt.s32.totalorder %s601_s25, 1 }
  0x47   : > { %v399_v2 = vld [vmem:[%s177_s0 + $0x4] sm:$0x3]  ;;  %v219_v3 = vmax.f32 %v212_v0, %v398_v1  ;;  %v400_v4 = vld [vmem:[%s177_s0 + $0x6] sm:$0x3]  ;;  %s229_s28 = sld [smem:[#allocation3]]  ;;  %s401_s30 = sld [smem:[#allocation3 + $0x1]] }
  0x48   : > { %s205_s6 = scalar_select %p204_p12, %s601_s25, 1  ;;  %vm273_vm4 = vcmask 1041408  }
  0x49   : > { %v220_v5 = vmax.f32 %v219_v3, %v399_v2  ;;  %s402_s4 = sld [smem:[#allocation3 + $0x2]]  ;;  %s403_s5 = sld [smem:[#allocation3 + $0x3]] }
  0x4a   : > { %s397_s15 = sshll.u32 %s205_s6, 1  ;;  %s203_s10 = scalar_lea.vmem [#allocation7], %s760_s16 }
  0x4b   : > { %v221_v6 = vmax.f32 %v220_v5, %v400_v4  ;;  %s210_s19 = scalar_lea.vmem %s829_s2, %s397_s15  ;;  %s296_s11 = sshll.u32 %s203_s10, 4  ;;  %s775_s11 = int_to_ptr.vmem [resolvable:$true] %s296_s11 }
  0x4c   : > { %v211_v18 = vld [vmem:[%s210_s19] sm:$0x3]  ;;  %s404_s12 = sshll.u32 %s601_s25, 4  ;;  %s283_s21 = scalar_lea.sflag [#allocation6], %s760_s16 }
  0x4d   : > { %v222_v7 = vsub.f32 %v212_v0, %v221_v6  ;;  %v232_v8 = vsub.f32 %v398_v1, %v221_v6  ;;  %v242_v9 = vsub.f32 %v399_v2, %v221_v6  ;;  %v252_v10 = vsub.f32 %v400_v4, %v221_v6  ;;  %s780_s20 = scalar_lea.hbm %s830_s3, %s404_s12  ;;  %s525_s0 = scalar_lea.vmem %s775_s11, 16 }
  0x4e   : > { %vm226_vm0 = vcmp.eq.s32.totalorder %v211_v18, 0  ;;  %vm236_vm1 = vcmp.eq.s32.totalorder %v211_v18, 1  ;;  %v230_v25 = vstv %s229_s28  ;;  %vm246_vm2 = vcmp.eq.s32.totalorder %v211_v18, 2  ;;  %p526_p11 = scmp.ne.s32.totalorder %s775_s11, %s525_s0  ;;  %p838_p0 = scmp.ne.s32.totalorder %s834_s7, 0 }
  0x4f   : > { %v223_v11 = vmul.f32 1.442695, %v222_v7  ;;  %v233_v12 = vmul.f32 1.442695, %v232_v8  ;;  %v243_v13 = vmul.f32 1.442695, %v242_v9  ;;  %v240_v29 = vstv %s401_s30 }
  0x50   : > { %v253_v14 = vmul.f32 1.442695, %v252_v10  ;;  %v227_v24 = vsel %vm226_vm0, %v222_v7, 0.0  ;;  %v231_v28 = vsel %vm226_vm0, %v230_v25, 1.0  ;;  %vm256_vm3 = vcmp.eq.s32.totalorder %v211_v18, 3  ;;  %p527_p3 = pnand %p526_p11, %p838_p0  ;;  %s615_s25 = smov [#allocation7]  }
  0x51   : > { %473 = vpow2.f32 %v223_v11  ;;  %v237_v27 = vsel %vm236_vm1, %v232_v8, %v227_v24  ;;  %v241_v32 = vsel %vm236_vm1, %v240_v29, %v231_v28  ;;  %v250_v33 = vstv %s402_s4  ;;  %s529_s6 = sshll.u32 %s615_s25, 4  ;;  %s530_s6 = int_to_ptr.vmem [resolvable:$false] %s529_s6 }
  0x52   : > { %475 = vpow2.f32 %v233_v12  ;;  %v247_v31 = vsel %vm246_vm2, %v242_v9, %v237_v27  ;;  %v251_v39 = vsel %vm246_vm2, %v250_v33, %v241_v32  ;;  %v260_v40 = vstv %s403_s5  ;;  %p528_p9 = pneg %p527_p3  ;;  %s531_s15 = scalar_lea.vmem %s530_s6, 32 }
  0x53   : > { %477 = vpow2.f32 %v243_v13  ;;  %v257_v37 = vsel %vm256_vm3, %v252_v10, %v247_v31  ;;  %v261_v44 = vsel %vm256_vm3, %v260_v40, %v251_v39  ;;  %p532_p2 = scmp.lt.s32.totalorder %s775_s11, %s530_s6  ;;  %p533_p5 = scmp.lt.s32.totalorder %s531_s15, %s525_s0 }
  0x54   : > { %479 = vpow2.f32 %v253_v14 }
  0x55   : > { %p534_p8 = por %p533_p5, %p532_p2 }
  0x57   : > { %p535_p7 = pnand %p534_p8, %p528_p9 }
  0x5b   : > { %v474_v15 = vpop.eup %473 }
  0x5c   : > { %v476_v16 = vpop.eup %475  ;;  %v228_v23 = vsel %vm226_vm0, %v474_v15, 0.0 }
  0x5d   : > { %v478_v17 = vpop.eup %477  ;;  %v235_v19 = vadd.f32 %v476_v16, %v474_v15  ;;  %v238_v26 = vsel %vm236_vm1, %v476_v16, %v228_v23 }
  0x5e   : > { %v480_v20 = vpop.eup %479  ;;  %v248_v30 = vsel %vm246_vm2, %v478_v17, %v238_v26 }
  0x5f   : > { %v245_v21 = vadd.f32 %v478_v17, %v235_v19  ;;  %v258_v34 = vsel %vm256_vm3, %v480_v20, %v248_v30 }
  0x61   : > { %v255_v22 = vadd.f32 %v480_v20, %v245_v21 }
  0x63   : > { %481 = vlog2.f32 %v255_v22 }
  0x64   : > { %483 = vrcp.f32 %v255_v22 }
  0x6d   : > { %v482_v35 = vpop.eup %481 }
  0x6e   : > { %v484_v36 = vpop.eup %483  ;;  %v263_v38 = vmul.f32 0.6931472, %v482_v35 }
  0x6f   : > { %v267_v41 = vmul.f32 %v484_v36, %v258_v34 }
  0x70   : > { %v264_v42 = vsub.f32 %v257_v37, %v263_v38 }
  0x71   : > { %v268_v43 = vsub.f32 1.0, %v267_v41 }
  0x72   : > { %v265_v46 = vmul.f32 %v264_v42, %v261_v44 }
  0x73   : > { %v269_v45 = vmax.f32 %v268_v43, 0.0 }
  0x75   : > { %v270_v47 = vmul.f32 %v269_v45, %v269_v45 }
  0x77   : > { %v271_v48 = vsub.f32 0.0, %v270_v47 }
  0x79   : > { %v272_v49 = vmul.f32 %v271_v48, %v265_v46 }
  0x7b   : > { %v274_v50 = vsel %vm273_vm4, %v272_v49, 0.0 }
  0x7c   : > { %v275_v51 = vrot.slane %v274_v50, 4 }
  0x7e   : > { %v276_v52 = vadd.f32 %v275_v51, %v274_v50 }
  0x80   : > { %v277_v53 = vrot.slane %v276_v52, 2 }
  0x82   : > { %v278_v54 = vadd.f32 %v277_v53, %v276_v52 }
  0x84   : > { %v279_v55 = vrot.slane %v278_v54, 1 }
  0x86   : > { %v280_v56 = vadd.f32 %v279_v55, %v278_v54 }
  0x88   : > { %281 = vst [vmem:[%s203_s10] sm:$0x1] %v280_v56 }
  0x89   : > { %538 = shalt.err (!%p535_p7)
}
  0x8a   : > { %s539_s16 = scalar_lea.hbm %s780_s20, 16  ;;  %s543_s19 = scalar_lea.hbm %s830_s3, 32 }
  0x8b   : > { %p540_p10 = scmp.ne.s32.totalorder %s780_s20, %s539_s16  ;;  %p544_p4 = scmp.lt.u32.totalorder %s780_s20, %s830_s3 }
  0x8c   : > { %p545_p6 = scmp.lt.u32.totalorder %s543_s19, %s539_s16  ;;  %p547_p11 = scmp.lt.u32.totalorder %s539_s16, %s780_s20 }
  0x8d   : > { %p541_p13 = pnand %p540_p10, %p838_p0 }
  0x8e   : > { %p546_p12 = por %p545_p6, %p544_p4 }
  0x8f   : > { %p542_p1 = pneg %p541_p13 }
  0x90   : > { %p548_p3 = por %p547_p11, %p546_p12 }
  0x92   : > { %p549_p9 = pnand %p548_p3, %p542_p1 }
  0x94   : > { %552 = shalt.err (!%p549_p9)
}
  0x95   : > { %410 = dma.vmem_to_hbm [thread:$0]  (%p838_p0), %s775_s11, 16, %s780_s20, %s283_s21  }
  0x96 PF: > { %s308_s4 = sand.u32 1, %s589_s22   ;;  %p839_p2 = scmp.ne.s32.totalorder %s835_s9, 0 }
  0x97   : > { %p840_p5 = scmp.ge.s32.totalorder %s609_s27, 2  ;;  %s309_s5 = scalar_lea.sflag [#allocation6], %s308_s4 }
  0x99   : > { %p417_p8 = pnand %p840_p5, %p839_p2 }
  0x9b   : > { %584 = dma.done.wait (!%p417_p8), %s309_s5, 16  }
  0x9c   : > { %586 = vsyncadd (!%p417_p8), %s309_s5, 4294967280  ;;  %s23_s27 = sadd.s32 1, %s609_s27   ;;  %s841_s22 = smov %s593_s23 }
  0x9d   : > { %p20_p7 = scmp.ge.s32.totalorder %s23_s27, 4   ;;  %s842_s23 = smov %s597_s24 }
  0x9e   : > { %s843_s24 = smov %s704_s8  ;;  %s844_s25 = smov %s605_s26 }
  0x9f   : > { %s845_s26 = smov %s847_s29  ;;  %22 = sbr.rel (!%p20_p7) target bundleno = 18 (0x12), region = 79 }
  0xa6   :  { %313 = vsyncpa [#allocation5], 1 }
  0xa7   :  { %315 = vsyncpa [#allocation5 + $0x1], 1 }
  0xa8   :  { %316 = vsyncpa [#allocation6], 1 }
  0xa9   :  { %318 = vsyncpa [#allocation6 + $0x1], 1 }

</bundles_post_ra>
